<compile_context>
chip_gen: v7x
topology: tpu7x:2x2x1
jax: 0.10.0
libtpu: 0.0.40
codegen_flags: <defaults>
</compile_context>

<pallas_src>
import math

import jax
import jax.numpy as jnp
from jax.experimental import pallas as pl
from jax.experimental.pallas import tpu as pltpu

# Small, module-consistent shapes.
B, S, D, H = 2, 8, 32, 4          # batch, seq, hidden, heads
DH = D // H                        # head dim
N_LAYERS = 2                       # number of MultiHeadedSelfAttention modules
BS = B * S                         # batch folded into rows

HOOK_NAMES = ("in_feat", "keys", "queries", "values", "scores", "out_feat")


# ---------------------------------------------------------------------------
# Fused Pallas kernel: all layers (grid axis), full batch per step
# ---------------------------------------------------------------------------
def _make_fused_kernel(flags):
    scale = 1.0 / math.sqrt(DH)

    def kernel(x_ref, wqkv_ref, bqkv_ref, *out_refs):
        # Unpack optional hook outputs (static flags) + mandatory final state.
        refs = list(out_refs)
        hook = {}
        for name in HOOK_NAMES:
            hook[name] = refs.pop(0) if flags[name] else None
        h_ref = refs.pop(0)                 # final hidden state; same block
                                            # index every step -> VMEM resident

        layer = pl.program_id(0)

        @pl.when(layer == 0)
        def _():
            h_ref[...] = x_ref[...]

        x_cur = h_ref[...]                                   # (BS, D)
        if flags["in_feat"]:
            hook["in_feat"][0] = x_cur

        # Fused QKV projection: one (BS, D) @ (D, 3D) MXU matmul.
        qkv = (jnp.dot(x_cur, wqkv_ref[0],
                       preferred_element_type=jnp.float32) + bqkv_ref[0])
        q = qkv[:, 0 * D:1 * D]
        k = qkv[:, 1 * D:2 * D]
        v = qkv[:, 2 * D:3 * D]
        if flags["queries"]:
            hook["queries"][0] = q
        if flags["keys"]:
            hook["keys"][0] = k
        if flags["values"]:
            hook["values"][0] = v

        qs = q * scale                       # scale once; hooks keep raw q
        score_blocks = []
        batch_outs = []
        for b in range(B):                   # static loops; B*H tiny matmuls
            head_outs = []
            for h in range(H):
                r0, c0 = b * S, h * DH
                qh = qs[r0:r0 + S, c0:c0 + DH]
                kh = k[r0:r0 + S, c0:c0 + DH]
                vh = v[r0:r0 + S, c0:c0 + DH]
                s = jnp.dot(qh, kh.T, preferred_element_type=jnp.float32)
                s = s - jnp.max(s, axis=-1, keepdims=True)
                e = jnp.exp(s)
                attn = e * pl.reciprocal(jnp.sum(e, axis=-1, keepdims=True))
                score_blocks.append(attn)
                head_outs.append(
                    jnp.dot(attn, vh, preferred_element_type=jnp.float32))
            batch_outs.append(jnp.concatenate(head_outs, axis=-1))  # (S, D)

        if flags["scores"]:
            # Lane-dense slab: columns ordered (batch, head, key) -> (S, B*H*S)
            hook["scores"][0] = jnp.concatenate(score_blocks, axis=-1)

        new_h = jnp.concatenate(batch_outs, axis=0)                 # (BS, D)
        if flags["out_feat"]:
            hook["out_feat"][0] = new_h
        h_ref[...] = new_h                   # carry hidden state to next layer

    return kernel


def run_attention_stack(x, wqkv, bqkv, flags):
    """Run the fused stacked-MHSA kernel. Returns (acts_dict, model_output)."""
    x2d = x.reshape(BS, D)

    in_specs = [
        pl.BlockSpec((BS, D), lambda l: (0, 0)),            # x (read at layer 0)
        pl.BlockSpec((1, D, 3 * D), lambda l: (l, 0, 0)),   # per-layer fused W
        pl.BlockSpec((1, 1, 3 * D), lambda l: (l, 0, 0)),   # per-layer fused b
    ]

    layer_shape = jax.ShapeDtypeStruct((N_LAYERS, BS, D), jnp.float32)
    layer_spec = pl.BlockSpec((1, BS, D), lambda l: (l, 0, 0))
    score_shape = jax.ShapeDtypeStruct((N_LAYERS, S, B * H * S), jnp.float32)
    score_spec = pl.BlockSpec((1, S, B * H * S), lambda l: (l, 0, 0))

    out_shapes, out_specs = [], []
    for name in HOOK_NAMES:
        if flags[name]:
            out_shapes.append(score_shape if name == "scores" else layer_shape)
            out_specs.append(score_spec if name == "scores" else layer_spec)
    # Final hidden state: same block index every step -> stays resident in VMEM.
    out_shapes.append(jax.ShapeDtypeStruct((BS, D), jnp.float32))
    out_specs.append(pl.BlockSpec((BS, D), lambda l: (0, 0)))

    outs = pl.pallas_call(
        _make_fused_kernel(flags),
        out_shape=tuple(out_shapes),
        grid=(N_LAYERS,),
        in_specs=in_specs,
        out_specs=tuple(out_specs),
        compiler_params=pltpu.CompilerParams(
            dimension_semantics=("arbitrary",)),   # layers are sequential
    )(x2d, wqkv, bqkv)

    outs = list(outs)
    acts = {}
    for name in HOOK_NAMES:
        if not flags[name]:
            continue
        raw = outs.pop(0)
        if name == "scores":
            # (L, S, B*H*S) -> (L, B, H, S, S)
            sc = raw.reshape(N_LAYERS, S, B, H, S).transpose(0, 2, 3, 1, 4)
            acts[name] = [sc[l] for l in range(N_LAYERS)]
        else:
            acts[name] = [raw[l].reshape(B, S, D) for l in range(N_LAYERS)]
    final = outs.pop(0).reshape(B, S, D)
    return acts, final


# ---------------------------------------------------------------------------
# ViTAttHookHolder equivalent
# ---------------------------------------------------------------------------
class ViTAttHookHolder:
    """JAX/Pallas port. Holds params for N_LAYERS MHSA modules; forward()
    runs the stacked-attention 'classifier' in one fused Pallas kernel and
    returns the hooked activations plus the model output."""

    def __init__(self, key, in_feat=True, keys=True, queries=True,
                 values=True, scores=True, out_feat=True, sl=None):
        self.flags = dict(in_feat=in_feat, keys=keys, queries=queries,
                          values=values, scores=scores, out_feat=out_feat)
        self.sl = slice(None, None) if sl is None else sl
        self.params = []
        for _ in range(N_LAYERS):
            layer_p = {}
            for name in ("q", "k", "v"):
                key, kw, kb = jax.random.split(key, 3)
                layer_p["w" + name] = (
                    jax.random.normal(kw, (D, D), jnp.float32) / math.sqrt(D))
                layer_p["b" + name] = (
                    0.01 * jax.random.normal(kb, (1, D), jnp.float32))
            self.params.append(layer_p)
        # Fused / stacked parameters consumed by the kernel (one-time concat).
        self.wqkv = jnp.stack(
            [jnp.concatenate([p["wq"], p["wk"], p["wv"]], axis=1)
             for p in self.params])                          # (L, D, 3D)
        self.bqkv = jnp.stack(
            [jnp.concatenate([p["bq"], p["bk"], p["bv"]], axis=1)
             for p in self.params])                          # (L, 1, 3D)
        flags = dict(self.flags)
        self._runner = jax.jit(
            lambda xx, ww, bb: run_attention_stack(xx, ww, bb, flags))

    def forward(self, x):
        if x is None:
            return {n: [] for n in HOOK_NAMES if self.flags[n]}, None
        acts, out = self._runner(x, self.wqkv, self.bqkv)
        # `sl` only restricts which hooked layers are reported (as in PyTorch).
        acts = {n: v[self.sl] for n, v in acts.items()}
        return acts, out


# ---------------------------------------------------------------------------
# Pure-JAX reference for validation
# ---------------------------------------------------------------------------
def _ref_layer(x, p):
    q = x @ p["wq"] + p["bq"]
    k = x @ p["wk"] + p["bk"]
    v = x @ p["wv"] + p["bv"]
    qh = q.reshape(B, S, H, DH).transpose(0, 2, 1, 3)
    kh = k.reshape(B, S, H, DH).transpose(0, 2, 1, 3)
    vh = v.reshape(B, S, H, DH).transpose(0, 2, 1, 3)
    sc = jnp.einsum("bhqd,bhkd->bhqk", qh, kh) / math.sqrt(DH)
    sc = jax.nn.softmax(sc, axis=-1)
    o = (jnp.einsum("bhqk,bhkd->bhqd", sc, vh)
         .transpose(0, 2, 1, 3).reshape(B, S, D))
    return q, k, v, sc, o


if __name__ == "__main__":
    root = jax.random.PRNGKey(0)
    k_param, k_x = jax.random.split(root)
    holder = ViTAttHookHolder(k_param)
    x = jax.random.normal(k_x, (B, S, D), jnp.float32)

    acts, out = holder.forward(x)
    out = jax.block_until_ready(out)

    # Validate against pure-JAX reference.
    h = x
    for layer, p in enumerate(holder.params):
        rq, rk, rv, rsc, ro = _ref_layer(h, p)
        assert jnp.allclose(acts["in_feat"][layer], h, atol=1e-4, rtol=1e-4)
        assert jnp.allclose(acts["queries"][layer], rq, atol=1e-4, rtol=1e-4)
        assert jnp.allclose(acts["keys"][layer], rk, atol=1e-4, rtol=1e-4)
        assert jnp.allclose(acts["values"][layer], rv, atol=1e-4, rtol=1e-4)
        assert jnp.allclose(acts["scores"][layer], rsc, atol=1e-4, rtol=1e-4)
        assert jnp.allclose(acts["out_feat"][layer], ro, atol=1e-4, rtol=1e-4)
        h = ro
    assert jnp.allclose(out, h, atol=1e-4, rtol=1e-4)
    assert set(acts.keys()) == set(HOOK_NAMES)

    print("KERNEL_OK")
</pallas_src>

<mosaic_0001>
module attributes {stable_mosaic.version = 11 : i64} {
  func.func @kernel(%arg0: i32, %arg1: memref<16x32xf32, #tpu.memory_space<vmem>>, %arg2: memref<1x32x96xf32, #tpu.memory_space<vmem>>, %arg3: memref<1x1x96xf32, #tpu.memory_space<vmem>>, %arg4: memref<1x16x32xf32, #tpu.memory_space<vmem>>, %arg5: memref<1x16x32xf32, #tpu.memory_space<vmem>>, %arg6: memref<1x16x32xf32, #tpu.memory_space<vmem>>, %arg7: memref<1x16x32xf32, #tpu.memory_space<vmem>>, %arg8: memref<1x8x64xf32, #tpu.memory_space<vmem>>, %arg9: memref<1x16x32xf32, #tpu.memory_space<vmem>>, %arg10: memref<16x32xf32, #tpu.memory_space<vmem>>) attributes {dimension_semantics = [#tpu.dimension_semantics<arbitrary>], iteration_bounds = array<i64: 2>, scalar_prefetch = 0 : i64, scratch_operands = 0 : i64, tpu.core_type = #tpu.core_type<tc>, window_params = [{pipeline_mode = #tpu.pipeline_mode<synchronous>, transform_indices = @transform_0, window_bounds = array<i64: 16, 32>}, {transform_indices = @transform_1, window_bounds = array<i64: 1, 32, 96>}, {transform_indices = @transform_2, window_bounds = array<i64: 1, 1, 96>}, {transform_indices = @transform_3, window_bounds = array<i64: 1, 16, 32>}, {transform_indices = @transform_4, window_bounds = array<i64: 1, 16, 32>}, {transform_indices = @transform_5, window_bounds = array<i64: 1, 16, 32>}, {transform_indices = @transform_6, window_bounds = array<i64: 1, 16, 32>}, {transform_indices = @transform_7, window_bounds = array<i64: 1, 8, 64>}, {transform_indices = @transform_8, window_bounds = array<i64: 1, 16, 32>}, {pipeline_mode = #tpu.pipeline_mode<synchronous>, transform_indices = @transform_9, window_bounds = array<i64: 16, 32>}]} {
    %c0_i32 = arith.constant 0 : i32
    %0 = arith.cmpi eq, %arg0, %c0_i32 : i32
    %1 = arith.extui %0 : i1 to i32
    %c0_i32_0 = arith.constant 0 : i32
    %2 = arith.cmpi ne, %1, %c0_i32_0 : i32
    scf.if %2 {
      %c0_61 = arith.constant 0 : index
      %c0_62 = arith.constant 0 : index
      %167 = vector.load %arg1[%c0_61, %c0_62] : memref<16x32xf32, #tpu.memory_space<vmem>>, vector<16x32xf32>
      %c0_63 = arith.constant 0 : index
      %c0_64 = arith.constant 0 : index
      %168 = vector.load %arg10[%c0_63, %c0_64] : memref<16x32xf32, #tpu.memory_space<vmem>>, vector<16x32xf32>
      tpu.vector_store %arg10[%c0_63, %c0_64], %167 {strides = array<i32>} : memref<16x32xf32, #tpu.memory_space<vmem>>, vector<16x32xf32>,
    } else {
    }
    %c0 = arith.constant 0 : index
    %c0_1 = arith.constant 0 : index
    %3 = vector.load %arg10[%c0, %c0_1] : memref<16x32xf32, #tpu.memory_space<vmem>>, vector<16x32xf32>
    %c0_2 = arith.constant 0 : index
    %c0_3 = arith.constant 0 : index
    %c0_4 = arith.constant 0 : index
    %4 = vector.load %arg4[%c0_2, %c0_3, %c0_4] : memref<1x16x32xf32, #tpu.memory_space<vmem>>, vector<1x16x32xf32>
    %5 = vector.shape_cast %4 : vector<1x16x32xf32> to vector<16x32xf32>
    %6 = vector.shape_cast %3 : vector<16x32xf32> to vector<1x16x32xf32>
    tpu.vector_store %arg4[%c0_2, %c0_3, %c0_4], %6 {strides = array<i32>} : memref<1x16x32xf32, #tpu.memory_space<vmem>>, vector<1x16x32xf32>,
    %c0_5 = arith.constant 0 : index
    %c0_6 = arith.constant 0 : index
    %c0_7 = arith.constant 0 : index
    %7 = vector.load %arg2[%c0_5, %c0_6, %c0_7] : memref<1x32x96xf32, #tpu.memory_space<vmem>>, vector<1x32x96xf32>
    %8 = vector.shape_cast %7 : vector<1x32x96xf32> to vector<32x96xf32>
    %cst = arith.constant dense<0.000000e+00> : vector<16x96xf32>
    %9 = tpu.matmul %3, %8, %cst {dimension_numbers = #tpu.dot_dimension_numbers<[1], [0], [0], [1], [0, 0, 1, 1], [], []>} : vector<16x32xf32>, vector<32x96xf32>, vector<16x96xf32> -> vector<16x96xf32>
    %c0_8 = arith.constant 0 : index
    %c0_9 = arith.constant 0 : index
    %c0_10 = arith.constant 0 : index
    %10 = vector.load %arg3[%c0_8, %c0_9, %c0_10] : memref<1x1x96xf32, #tpu.memory_space<vmem>>, vector<1x1x96xf32>
    %11 = vector.shape_cast %10 : vector<1x1x96xf32> to vector<1x96xf32>
    %12 = vector.broadcast %11 : vector<1x96xf32> to vector<16x96xf32>
    %13 = arith.addf %9, %12 : vector<16x96xf32>
    %14 = vector.extract_strided_slice %13 {offsets = [0, 0], sizes = [16, 32], strides = [1, 1]} : vector<16x96xf32> to vector<16x32xf32>
    %15 = vector.extract_strided_slice %13 {offsets = [0, 32], sizes = [16, 32], strides = [1, 1]} : vector<16x96xf32> to vector<16x32xf32>
    %16 = vector.extract_strided_slice %13 {offsets = [0, 64], sizes = [16, 32], strides = [1, 1]} : vector<16x96xf32> to vector<16x32xf32>
    %c0_11 = arith.constant 0 : index
    %c0_12 = arith.constant 0 : index
    %c0_13 = arith.constant 0 : index
    %17 = vector.load %arg6[%c0_11, %c0_12, %c0_13] : memref<1x16x32xf32, #tpu.memory_space<vmem>>, vector<1x16x32xf32>
    %18 = vector.shape_cast %17 : vector<1x16x32xf32> to vector<16x32xf32>
    %19 = vector.shape_cast %14 : vector<16x32xf32> to vector<1x16x32xf32>
    tpu.vector_store %arg6[%c0_11, %c0_12, %c0_13], %19 {strides = array<i32>} : memref<1x16x32xf32, #tpu.memory_space<vmem>>, vector<1x16x32xf32>,
    %c0_14 = arith.constant 0 : index
    %c0_15 = arith.constant 0 : index
    %c0_16 = arith.constant 0 : index
    %20 = vector.load %arg5[%c0_14, %c0_15, %c0_16] : memref<1x16x32xf32, #tpu.memory_space<vmem>>, vector<1x16x32xf32>
    %21 = vector.shape_cast %20 : vector<1x16x32xf32> to vector<16x32xf32>
    %22 = vector.shape_cast %15 : vector<16x32xf32> to vector<1x16x32xf32>
    tpu.vector_store %arg5[%c0_14, %c0_15, %c0_16], %22 {strides = array<i32>} : memref<1x16x32xf32, #tpu.memory_space<vmem>>, vector<1x16x32xf32>,
    %c0_17 = arith.constant 0 : index
    %c0_18 = arith.constant 0 : index
    %c0_19 = arith.constant 0 : index
    %23 = vector.load %arg7[%c0_17, %c0_18, %c0_19] : memref<1x16x32xf32, #tpu.memory_space<vmem>>, vector<1x16x32xf32>
    %24 = vector.shape_cast %23 : vector<1x16x32xf32> to vector<16x32xf32>
    %25 = vector.shape_cast %16 : vector<16x32xf32> to vector<1x16x32xf32>
    tpu.vector_store %arg7[%c0_17, %c0_18, %c0_19], %25 {strides = array<i32>} : memref<1x16x32xf32, #tpu.memory_space<vmem>>, vector<1x16x32xf32>,
    %cst_20 = arith.constant 0.353553385 : f32
    %26 = vector.broadcast %cst_20 : f32 to vector<16x32xf32>
    %27 = arith.mulf %14, %26 : vector<16x32xf32>
    %28 = vector.extract_strided_slice %27 {offsets = [0, 0], sizes = [8, 8], strides = [1, 1]} : vector<16x32xf32> to vector<8x8xf32>
    %29 = vector.extract_strided_slice %15 {offsets = [0, 0], sizes = [8, 8], strides = [1, 1]} : vector<16x32xf32> to vector<8x8xf32>
    %30 = vector.extract_strided_slice %16 {offsets = [0, 0], sizes = [8, 8], strides = [1, 1]} : vector<16x32xf32> to vector<8x8xf32>
    %31 = tpu.transpose %29, [1, 0] : vector<8x8xf32> -> vector<8x8xf32>
    %cst_21 = arith.constant dense<0.000000e+00> : vector<8x8xf32>
    %32 = tpu.matmul %28, %31, %cst_21 {dimension_numbers = #tpu.dot_dimension_numbers<[1], [0], [0], [1], [0, 0, 1, 1], [], []>} : vector<8x8xf32>, vector<8x8xf32>, vector<8x8xf32> -> vector<8x8xf32>
    %cst_22 = arith.constant dense<0xFF800000> : vector<8xf32>
    %33 = vector.multi_reduction <maximumf>, %32, %cst_22 [1] : vector<8x8xf32> to vector<8xf32>
    %34 = vector.shape_cast %33 : vector<8xf32> to vector<8x1xf32>
    %35 = vector.broadcast %34 : vector<8x1xf32> to vector<8x8xf32>
    %36 = arith.subf %32, %35 : vector<8x8xf32>
    %37 = math.exp %36 : vector<8x8xf32>
    %cst_23 = arith.constant dense<0.000000e+00> : vector<8xf32>
    %38 = vector.multi_reduction <add>, %37, %cst_23 [1] : vector<8x8xf32> to vector<8xf32>
    %39 = vector.shape_cast %38 : vector<8xf32> to vector<8x1xf32>
    %40 = tpu.reciprocal %39 : vector<8x1xf32> -> vector<8x1xf32>
    %41 = vector.broadcast %40 : vector<8x1xf32> to vector<8x8xf32>
    %42 = arith.mulf %37, %41 : vector<8x8xf32>
    %cst_24 = arith.constant dense<0.000000e+00> : vector<8x8xf32>
    %43 = tpu.matmul %42, %30, %cst_24 {dimension_numbers = #tpu.dot_dimension_numbers<[1], [0], [0], [1], [0, 0, 1, 1], [], []>} : vector<8x8xf32>, vector<8x8xf32>, vector<8x8xf32> -> vector<8x8xf32>
    %44 = vector.extract_strided_slice %27 {offsets = [0, 8], sizes = [8, 8], strides = [1, 1]} : vector<16x32xf32> to vector<8x8xf32>
    %45 = vector.extract_strided_slice %15 {offsets = [0, 8], sizes = [8, 8], strides = [1, 1]} : vector<16x32xf32> to vector<8x8xf32>
    %46 = vector.extract_strided_slice %16 {offsets = [0, 8], sizes = [8, 8], strides = [1, 1]} : vector<16x32xf32> to vector<8x8xf32>
    %47 = tpu.transpose %45, [1, 0] : vector<8x8xf32> -> vector<8x8xf32>
    %cst_25 = arith.constant dense<0.000000e+00> : vector<8x8xf32>
    %48 = tpu.matmul %44, %47, %cst_25 {dimension_numbers = #tpu.dot_dimension_numbers<[1], [0], [0], [1], [0, 0, 1, 1], [], []>} : vector<8x8xf32>, vector<8x8xf32>, vector<8x8xf32> -> vector<8x8xf32>
    %cst_26 = arith.constant dense<0xFF800000> : vector<8xf32>
    %49 = vector.multi_reduction <maximumf>, %48, %cst_26 [1] : vector<8x8xf32> to vector<8xf32>
    %50 = vector.shape_cast %49 : vector<8xf32> to vector<8x1xf32>
    %51 = vector.broadcast %50 : vector<8x1xf32> to vector<8x8xf32>
    %52 = arith.subf %48, %51 : vector<8x8xf32>
    %53 = math.exp %52 : vector<8x8xf32>
    %cst_27 = arith.constant dense<0.000000e+00> : vector<8xf32>
    %54 = vector.multi_reduction <add>, %53, %cst_27 [1] : vector<8x8xf32> to vector<8xf32>
    %55 = vector.shape_cast %54 : vector<8xf32> to vector<8x1xf32>
    %56 = tpu.reciprocal %55 : vector<8x1xf32> -> vector<8x1xf32>
    %57 = vector.broadcast %56 : vector<8x1xf32> to vector<8x8xf32>
    %58 = arith.mulf %53, %57 : vector<8x8xf32>
    %cst_28 = arith.constant dense<0.000000e+00> : vector<8x8xf32>
    %59 = tpu.matmul %58, %46, %cst_28 {dimension_numbers = #tpu.dot_dimension_numbers<[1], [0], [0], [1], [0, 0, 1, 1], [], []>} : vector<8x8xf32>, vector<8x8xf32>, vector<8x8xf32> -> vector<8x8xf32>
    %60 = vector.extract_strided_slice %27 {offsets = [0, 16], sizes = [8, 8], strides = [1, 1]} : vector<16x32xf32> to vector<8x8xf32>
    %61 = vector.extract_strided_slice %15 {offsets = [0, 16], sizes = [8, 8], strides = [1, 1]} : vector<16x32xf32> to vector<8x8xf32>
    %62 = vector.extract_strided_slice %16 {offsets = [0, 16], sizes = [8, 8], strides = [1, 1]} : vector<16x32xf32> to vector<8x8xf32>
    %63 = tpu.transpose %61, [1, 0] : vector<8x8xf32> -> vector<8x8xf32>
    %cst_29 = arith.constant dense<0.000000e+00> : vector<8x8xf32>
    %64 = tpu.matmul %60, %63, %cst_29 {dimension_numbers = #tpu.dot_dimension_numbers<[1], [0], [0], [1], [0, 0, 1, 1], [], []>} : vector<8x8xf32>, vector<8x8xf32>, vector<8x8xf32> -> vector<8x8xf32>
    %cst_30 = arith.constant dense<0xFF800000> : vector<8xf32>
    %65 = vector.multi_reduction <maximumf>, %64, %cst_30 [1] : vector<8x8xf32> to vector<8xf32>
    %66 = vector.shape_cast %65 : vector<8xf32> to vector<8x1xf32>
    %67 = vector.broadcast %66 : vector<8x1xf32> to vector<8x8xf32>
    %68 = arith.subf %64, %67 : vector<8x8xf32>
    %69 = math.exp %68 : vector<8x8xf32>
    %cst_31 = arith.constant dense<0.000000e+00> : vector<8xf32>
    %70 = vector.multi_reduction <add>, %69, %cst_31 [1] : vector<8x8xf32> to vector<8xf32>
    %71 = vector.shape_cast %70 : vector<8xf32> to vector<8x1xf32>
    %72 = tpu.reciprocal %71 : vector<8x1xf32> -> vector<8x1xf32>
    %73 = vector.broadcast %72 : vector<8x1xf32> to vector<8x8xf32>
    %74 = arith.mulf %69, %73 : vector<8x8xf32>
    %cst_32 = arith.constant dense<0.000000e+00> : vector<8x8xf32>
    %75 = tpu.matmul %74, %62, %cst_32 {dimension_numbers = #tpu.dot_dimension_numbers<[1], [0], [0], [1], [0, 0, 1, 1], [], []>} : vector<8x8xf32>, vector<8x8xf32>, vector<8x8xf32> -> vector<8x8xf32>
    %76 = vector.extract_strided_slice %27 {offsets = [0, 24], sizes = [8, 8], strides = [1, 1]} : vector<16x32xf32> to vector<8x8xf32>
    %77 = vector.extract_strided_slice %15 {offsets = [0, 24], sizes = [8, 8], strides = [1, 1]} : vector<16x32xf32> to vector<8x8xf32>
    %78 = vector.extract_strided_slice %16 {offsets = [0, 24], sizes = [8, 8], strides = [1, 1]} : vector<16x32xf32> to vector<8x8xf32>
    %79 = tpu.transpose %77, [1, 0] : vector<8x8xf32> -> vector<8x8xf32>
    %cst_33 = arith.constant dense<0.000000e+00> : vector<8x8xf32>
    %80 = tpu.matmul %76, %79, %cst_33 {dimension_numbers = #tpu.dot_dimension_numbers<[1], [0], [0], [1], [0, 0, 1, 1], [], []>} : vector<8x8xf32>, vector<8x8xf32>, vector<8x8xf32> -> vector<8x8xf32>
    %cst_34 = arith.constant dense<0xFF800000> : vector<8xf32>
    %81 = vector.multi_reduction <maximumf>, %80, %cst_34 [1] : vector<8x8xf32> to vector<8xf32>
    %82 = vector.shape_cast %81 : vector<8xf32> to vector<8x1xf32>
    %83 = vector.broadcast %82 : vector<8x1xf32> to vector<8x8xf32>
    %84 = arith.subf %80, %83 : vector<8x8xf32>
    %85 = math.exp %84 : vector<8x8xf32>
    %cst_35 = arith.constant dense<0.000000e+00> : vector<8xf32>
    %86 = vector.multi_reduction <add>, %85, %cst_35 [1] : vector<8x8xf32> to vector<8xf32>
    %87 = vector.shape_cast %86 : vector<8xf32> to vector<8x1xf32>
    %88 = tpu.reciprocal %87 : vector<8x1xf32> -> vector<8x1xf32>
    %89 = vector.broadcast %88 : vector<8x1xf32> to vector<8x8xf32>
    %90 = arith.mulf %85, %89 : vector<8x8xf32>
    %cst_36 = arith.constant dense<0.000000e+00> : vector<8x8xf32>
    %91 = tpu.matmul %90, %78, %cst_36 {dimension_numbers = #tpu.dot_dimension_numbers<[1], [0], [0], [1], [0, 0, 1, 1], [], []>} : vector<8x8xf32>, vector<8x8xf32>, vector<8x8xf32> -> vector<8x8xf32>
    %92 = tpu.concatenate %43, %59, %75, %91 in 1 : vector<8x8xf32>, vector<8x8xf32>, vector<8x8xf32>, vector<8x8xf32> -> vector<8x32xf32>
    %93 = vector.extract_strided_slice %27 {offsets = [8, 0], sizes = [8, 8], strides = [1, 1]} : vector<16x32xf32> to vector<8x8xf32>
    %94 = vector.extract_strided_slice %15 {offsets = [8, 0], sizes = [8, 8], strides = [1, 1]} : vector<16x32xf32> to vector<8x8xf32>
    %95 = vector.extract_strided_slice %16 {offsets = [8, 0], sizes = [8, 8], strides = [1, 1]} : vector<16x32xf32> to vector<8x8xf32>
    %96 = tpu.transpose %94, [1, 0] : vector<8x8xf32> -> vector<8x8xf32>
    %cst_37 = arith.constant dense<0.000000e+00> : vector<8x8xf32>
    %97 = tpu.matmul %93, %96, %cst_37 {dimension_numbers = #tpu.dot_dimension_numbers<[1], [0], [0], [1], [0, 0, 1, 1], [], []>} : vector<8x8xf32>, vector<8x8xf32>, vector<8x8xf32> -> vector<8x8xf32>
    %cst_38 = arith.constant dense<0xFF800000> : vector<8xf32>
    %98 = vector.multi_reduction <maximumf>, %97, %cst_38 [1] : vector<8x8xf32> to vector<8xf32>
    %99 = vector.shape_cast %98 : vector<8xf32> to vector<8x1xf32>
    %100 = vector.broadcast %99 : vector<8x1xf32> to vector<8x8xf32>
    %101 = arith.subf %97, %100 : vector<8x8xf32>
    %102 = math.exp %101 : vector<8x8xf32>
    %cst_39 = arith.constant dense<0.000000e+00> : vector<8xf32>
    %103 = vector.multi_reduction <add>, %102, %cst_39 [1] : vector<8x8xf32> to vector<8xf32>
    %104 = vector.shape_cast %103 : vector<8xf32> to vector<8x1xf32>
    %105 = tpu.reciprocal %104 : vector<8x1xf32> -> vector<8x1xf32>
    %106 = vector.broadcast %105 : vector<8x1xf32> to vector<8x8xf32>
    %107 = arith.mulf %102, %106 : vector<8x8xf32>
    %cst_40 = arith.constant dense<0.000000e+00> : vector<8x8xf32>
    %108 = tpu.matmul %107, %95, %cst_40 {dimension_numbers = #tpu.dot_dimension_numbers<[1], [0], [0], [1], [0, 0, 1, 1], [], []>} : vector<8x8xf32>, vector<8x8xf32>, vector<8x8xf32> -> vector<8x8xf32>
    %109 = vector.extract_strided_slice %27 {offsets = [8, 8], sizes = [8, 8], strides = [1, 1]} : vector<16x32xf32> to vector<8x8xf32>
    %110 = vector.extract_strided_slice %15 {offsets = [8, 8], sizes = [8, 8], strides = [1, 1]} : vector<16x32xf32> to vector<8x8xf32>
    %111 = vector.extract_strided_slice %16 {offsets = [8, 8], sizes = [8, 8], strides = [1, 1]} : vector<16x32xf32> to vector<8x8xf32>
    %112 = tpu.transpose %110, [1, 0] : vector<8x8xf32> -> vector<8x8xf32>
    %cst_41 = arith.constant dense<0.000000e+00> : vector<8x8xf32>
    %113 = tpu.matmul %109, %112, %cst_41 {dimension_numbers = #tpu.dot_dimension_numbers<[1], [0], [0], [1], [0, 0, 1, 1], [], []>} : vector<8x8xf32>, vector<8x8xf32>, vector<8x8xf32> -> vector<8x8xf32>
    %cst_42 = arith.constant dense<0xFF800000> : vector<8xf32>
    %114 = vector.multi_reduction <maximumf>, %113, %cst_42 [1] : vector<8x8xf32> to vector<8xf32>
    %115 = vector.shape_cast %114 : vector<8xf32> to vector<8x1xf32>
    %116 = vector.broadcast %115 : vector<8x1xf32> to vector<8x8xf32>
    %117 = arith.subf %113, %116 : vector<8x8xf32>
    %118 = math.exp %117 : vector<8x8xf32>
    %cst_43 = arith.constant dense<0.000000e+00> : vector<8xf32>
    %119 = vector.multi_reduction <add>, %118, %cst_43 [1] : vector<8x8xf32> to vector<8xf32>
    %120 = vector.shape_cast %119 : vector<8xf32> to vector<8x1xf32>
    %121 = tpu.reciprocal %120 : vector<8x1xf32> -> vector<8x1xf32>
    %122 = vector.broadcast %121 : vector<8x1xf32> to vector<8x8xf32>
    %123 = arith.mulf %118, %122 : vector<8x8xf32>
    %cst_44 = arith.constant dense<0.000000e+00> : vector<8x8xf32>
    %124 = tpu.matmul %123, %111, %cst_44 {dimension_numbers = #tpu.dot_dimension_numbers<[1], [0], [0], [1], [0, 0, 1, 1], [], []>} : vector<8x8xf32>, vector<8x8xf32>, vector<8x8xf32> -> vector<8x8xf32>
    %125 = vector.extract_strided_slice %27 {offsets = [8, 16], sizes = [8, 8], strides = [1, 1]} : vector<16x32xf32> to vector<8x8xf32>
    %126 = vector.extract_strided_slice %15 {offsets = [8, 16], sizes = [8, 8], strides = [1, 1]} : vector<16x32xf32> to vector<8x8xf32>
    %127 = vector.extract_strided_slice %16 {offsets = [8, 16], sizes = [8, 8], strides = [1, 1]} : vector<16x32xf32> to vector<8x8xf32>
    %128 = tpu.transpose %126, [1, 0] : vector<8x8xf32> -> vector<8x8xf32>
    %cst_45 = arith.constant dense<0.000000e+00> : vector<8x8xf32>
    %129 = tpu.matmul %125, %128, %cst_45 {dimension_numbers = #tpu.dot_dimension_numbers<[1], [0], [0], [1], [0, 0, 1, 1], [], []>} : vector<8x8xf32>, vector<8x8xf32>, vector<8x8xf32> -> vector<8x8xf32>
    %cst_46 = arith.constant dense<0xFF800000> : vector<8xf32>
    %130 = vector.multi_reduction <maximumf>, %129, %cst_46 [1] : vector<8x8xf32> to vector<8xf32>
    %131 = vector.shape_cast %130 : vector<8xf32> to vector<8x1xf32>
    %132 = vector.broadcast %131 : vector<8x1xf32> to vector<8x8xf32>
    %133 = arith.subf %129, %132 : vector<8x8xf32>
    %134 = math.exp %133 : vector<8x8xf32>
    %cst_47 = arith.constant dense<0.000000e+00> : vector<8xf32>
    %135 = vector.multi_reduction <add>, %134, %cst_47 [1] : vector<8x8xf32> to vector<8xf32>
    %136 = vector.shape_cast %135 : vector<8xf32> to vector<8x1xf32>
    %137 = tpu.reciprocal %136 : vector<8x1xf32> -> vector<8x1xf32>
    %138 = vector.broadcast %137 : vector<8x1xf32> to vector<8x8xf32>
    %139 = arith.mulf %134, %138 : vector<8x8xf32>
    %cst_48 = arith.constant dense<0.000000e+00> : vector<8x8xf32>
    %140 = tpu.matmul %139, %127, %cst_48 {dimension_numbers = #tpu.dot_dimension_numbers<[1], [0], [0], [1], [0, 0, 1, 1], [], []>} : vector<8x8xf32>, vector<8x8xf32>, vector<8x8xf32> -> vector<8x8xf32>
    %141 = vector.extract_strided_slice %27 {offsets = [8, 24], sizes = [8, 8], strides = [1, 1]} : vector<16x32xf32> to vector<8x8xf32>
    %142 = vector.extract_strided_slice %15 {offsets = [8, 24], sizes = [8, 8], strides = [1, 1]} : vector<16x32xf32> to vector<8x8xf32>
    %143 = vector.extract_strided_slice %16 {offsets = [8, 24], sizes = [8, 8], strides = [1, 1]} : vector<16x32xf32> to vector<8x8xf32>
    %144 = tpu.transpose %142, [1, 0] : vector<8x8xf32> -> vector<8x8xf32>
    %cst_49 = arith.constant dense<0.000000e+00> : vector<8x8xf32>
    %145 = tpu.matmul %141, %144, %cst_49 {dimension_numbers = #tpu.dot_dimension_numbers<[1], [0], [0], [1], [0, 0, 1, 1], [], []>} : vector<8x8xf32>, vector<8x8xf32>, vector<8x8xf32> -> vector<8x8xf32>
    %cst_50 = arith.constant dense<0xFF800000> : vector<8xf32>
    %146 = vector.multi_reduction <maximumf>, %145, %cst_50 [1] : vector<8x8xf32> to vector<8xf32>
    %147 = vector.shape_cast %146 : vector<8xf32> to vector<8x1xf32>
    %148 = vector.broadcast %147 : vector<8x1xf32> to vector<8x8xf32>
    %149 = arith.subf %145, %148 : vector<8x8xf32>
    %150 = math.exp %149 : vector<8x8xf32>
    %cst_51 = arith.constant dense<0.000000e+00> : vector<8xf32>
    %151 = vector.multi_reduction <add>, %150, %cst_51 [1] : vector<8x8xf32> to vector<8xf32>
    %152 = vector.shape_cast %151 : vector<8xf32> to vector<8x1xf32>
    %153 = tpu.reciprocal %152 : vector<8x1xf32> -> vector<8x1xf32>
    %154 = vector.broadcast %153 : vector<8x1xf32> to vector<8x8xf32>
    %155 = arith.mulf %150, %154 : vector<8x8xf32>
    %cst_52 = arith.constant dense<0.000000e+00> : vector<8x8xf32>
    %156 = tpu.matmul %155, %143, %cst_52 {dimension_numbers = #tpu.dot_dimension_numbers<[1], [0], [0], [1], [0, 0, 1, 1], [], []>} : vector<8x8xf32>, vector<8x8xf32>, vector<8x8xf32> -> vector<8x8xf32>
    %157 = tpu.concatenate %108, %124, %140, %156 in 1 : vector<8x8xf32>, vector<8x8xf32>, vector<8x8xf32>, vector<8x8xf32> -> vector<8x32xf32>
    %158 = tpu.concatenate %42, %58, %74, %90, %107, %123, %139, %155 in 1 : vector<8x8xf32>, vector<8x8xf32>, vector<8x8xf32>, vector<8x8xf32>, vector<8x8xf32>, vector<8x8xf32>, vector<8x8xf32>, vector<8x8xf32> -> vector<8x64xf32>
    %c0_53 = arith.constant 0 : index
    %c0_54 = arith.constant 0 : index
    %c0_55 = arith.constant 0 : index
    %159 = vector.load %arg8[%c0_53, %c0_54, %c0_55] : memref<1x8x64xf32, #tpu.memory_space<vmem>>, vector<1x8x64xf32>
    %160 = vector.shape_cast %159 : vector<1x8x64xf32> to vector<8x64xf32>
    %161 = vector.shape_cast %158 : vector<8x64xf32> to vector<1x8x64xf32>
    tpu.vector_store %arg8[%c0_53, %c0_54, %c0_55], %161 {strides = array<i32>} : memref<1x8x64xf32, #tpu.memory_space<vmem>>, vector<1x8x64xf32>,
    %162 = tpu.concatenate %92, %157 in 0 : vector<8x32xf32>, vector<8x32xf32> -> vector<16x32xf32>
    %c0_56 = arith.constant 0 : index
    %c0_57 = arith.constant 0 : index
    %c0_58 = arith.constant 0 : index
    %163 = vector.load %arg9[%c0_56, %c0_57, %c0_58] : memref<1x16x32xf32, #tpu.memory_space<vmem>>, vector<1x16x32xf32>
    %164 = vector.shape_cast %163 : vector<1x16x32xf32> to vector<16x32xf32>
    %165 = vector.shape_cast %162 : vector<16x32xf32> to vector<1x16x32xf32>
    tpu.vector_store %arg9[%c0_56, %c0_57, %c0_58], %165 {strides = array<i32>} : memref<1x16x32xf32, #tpu.memory_space<vmem>>, vector<1x16x32xf32>,
    %c0_59 = arith.constant 0 : index
    %c0_60 = arith.constant 0 : index
    %166 = vector.load %arg10[%c0_59, %c0_60] : memref<16x32xf32, #tpu.memory_space<vmem>>, vector<16x32xf32>
    tpu.vector_store %arg10[%c0_59, %c0_60], %162 {strides = array<i32>} : memref<16x32xf32, #tpu.memory_space<vmem>>, vector<16x32xf32>,
    return
  }
  func.func @transform_0(%arg0: i32) -> (i32, i32) {
    %c0_i32 = arith.constant 0 : i32
    %c0_i32_0 = arith.constant 0 : i32
    %c0_i32_1 = arith.constant 0 : i32
    return %c0_i32, %c0_i32_0 : i32, i32
  }
  func.func @transform_1(%arg0: i32) -> (i32, i32, i32) {
    %c0_i32 = arith.constant 0 : i32
    %c0_i32_0 = arith.constant 0 : i32
    %c0_i32_1 = arith.constant 0 : i32
    return %arg0, %c0_i32, %c0_i32_0 : i32, i32, i32
  }
  func.func @transform_2(%arg0: i32) -> (i32, i32, i32) {
    %c0_i32 = arith.constant 0 : i32
    %c0_i32_0 = arith.constant 0 : i32
    %c0_i32_1 = arith.constant 0 : i32
    return %arg0, %c0_i32, %c0_i32_0 : i32, i32, i32
  }
  func.func @transform_3(%arg0: i32) -> (i32, i32, i32) {
    %c0_i32 = arith.constant 0 : i32
    %c0_i32_0 = arith.constant 0 : i32
    %c0_i32_1 = arith.constant 0 : i32
    return %arg0, %c0_i32, %c0_i32_0 : i32, i32, i32
  }
  func.func @transform_4(%arg0: i32) -> (i32, i32, i32) {
    %c0_i32 = arith.constant 0 : i32
    %c0_i32_0 = arith.constant 0 : i32
    %c0_i32_1 = arith.constant 0 : i32
    return %arg0, %c0_i32, %c0_i32_0 : i32, i32, i32
  }
  func.func @transform_5(%arg0: i32) -> (i32, i32, i32) {
    %c0_i32 = arith.constant 0 : i32
    %c0_i32_0 = arith.constant 0 : i32
    %c0_i32_1 = arith.constant 0 : i32
    return %arg0, %c0_i32, %c0_i32_0 : i32, i32, i32
  }
  func.func @transform_6(%arg0: i32) -> (i32, i32, i32) {
    %c0_i32 = arith.constant 0 : i32
    %c0_i32_0 = arith.constant 0 : i32
    %c0_i32_1 = arith.constant 0 : i32
    return %arg0, %c0_i32, %c0_i32_0 : i32, i32, i32
  }
  func.func @transform_7(%arg0: i32) -> (i32, i32, i32) {
    %c0_i32 = arith.constant 0 : i32
    %c0_i32_0 = arith.constant 0 : i32
    %c0_i32_1 = arith.constant 0 : i32
    return %arg0, %c0_i32, %c0_i32_0 : i32, i32, i32
  }
  func.func @transform_8(%arg0: i32) -> (i32, i32, i32) {
    %c0_i32 = arith.constant 0 : i32
    %c0_i32_0 = arith.constant 0 : i32
    %c0_i32_1 = arith.constant 0 : i32
    return %arg0, %c0_i32, %c0_i32_0 : i32, i32, i32
  }
  func.func @transform_9(%arg0: i32) -> (i32, i32) {
    %c0_i32 = arith.constant 0 : i32
    %c0_i32_0 = arith.constant 0 : i32
    %c0_i32_1 = arith.constant 0 : i32
    return %c0_i32, %c0_i32_0 : i32, i32
  }
}

</mosaic_0001>

<bundles_post_ra>
// kernel: _lambda_.1
= control target key start
LH: loop header
LB: loop body
LE: loop exit
PB: predicated region body
PF: predicated region fallthrough
CT: control target
= control target key end

     0   :  { %s3140_s0 = inlined_call_operand.hbm [shape: f32[16,32], index: 0, kind: input, shape index: {}]   ;;  %s3141_s1 = inlined_call_operand.hbm [shape: f32[2,32,96], index: 1, kind: input, shape index: {}]   ;;  %s3142_s2 = inlined_call_operand.vmem [shape: f32[2,1,96], index: 2, kind: input, shape index: {}]   ;;  %s3143_s3 = inlined_call_operand.vmem [shape: f32[2,16,32], index: 3, kind: output, shape index: {0}]   ;;  %s3144_s4 = inlined_call_operand.vmem [shape: f32[2,16,32], index: 4, kind: output, shape index: {1}]   ;;  %s3145_s5 = inlined_call_operand.vmem [shape: f32[2,16,32], index: 5, kind: output, shape index: {2}]   ;;  %s3146_s6 = inlined_call_operand.vmem [shape: f32[2,16,32], index: 6, kind: output, shape index: {3}]   ;;  %s3147_s7 = inlined_call_operand.vmem [shape: f32[2,8,64], index: 7, kind: output, shape index: {4}]   ;;  %s3148_s8 = inlined_call_operand.vmem [shape: f32[2,16,32], index: 8, kind: output, shape index: {5}]   ;;  %s3149_s9 = inlined_call_operand.hbm [shape: f32[16,32], index: 9, kind: output, shape index: {6}]  }
   0x1   :  { %3153 = sst [smem:[#allocation11_spill]] %s3140_s0 }
   0x2   :  { %3154 = sst [smem:[#allocation12_spill]] %s3141_s1 }
   0x3   :  { %15 = vsyncpa [#allocation3], 0 }
   0x4   :  { %16 = vsyncpa [#allocation6], 0 }
   0x5   :  { %18 = vsyncpa [#allocation6 + $0x1], 0 }
   0x6   :  { %19 = vsyncpa [#allocation4], 0  ;;  %s2728_s30 = smov 0   ;;  %s2730_s10 = smov 0  }
   0x7   :  { %s2732_s11 = smov 0   ;;  %s2734_s12 = smov 0  }
   0x8 LB: > { %s2747_s13 = sadd.s32 4294967295, %s2653_s12   ;;  %p66_p0 = scmp.ne.s32.totalorder %s2645_s10, %s2641_s30  ;;  %s2653_s12 = sphi %s2734_s12, %s3170_s12   ;;  %s2649_s11 = sphi %s2732_s11, %s3169_s11   ;;  %s2645_s10 = sphi %s2730_s10, %s3168_s10   ;;  %s2641_s30 = sphi %s2728_s30, %s3167_s30  }
   0x9   : > { %p3150_p1 = scmp.eq.s32.totalorder %s2747_s13, 0  ;;  %p2223_p2 = scmp.ge.s32.totalorder %s2653_s12, 1 }
   0xa   : > { %p280_p3 = scmp.lt.s32.totalorder %s2653_s12, 3  ;;  %s2655_s16 = smov [#allocation2]  }
   0xb   : > { %p2756_p5 = por %p3150_p1, %p66_p0  ;;  %s292_s17 = sshll.u32 %s2655_s16, 4  ;;  %s293_s17 = int_to_ptr.vmem [resolvable:$true] %s292_s17 }
   0xc   : > { %p2760_p6 = pnand %p2223_p2, %p280_p3  ;;  %s2773_s19 = sadd.s32 1, %s2653_s12  }
   0xd   : > { %s3155_s14 = scalar_select %p2756_p5, 1, 0 }
   0xe   : > { %s3156_s15 = scalar_select %p2760_p6, 1, 0 }
   0xf   : > { %p2428_p7 = pneg %p2760_p6  ;;  %s53_s20 = sadd.s32 1, %s2649_s11 }
  0x10   : > { %s50_s21 = ssub.s32 %s2653_s12, %s2773_s19  ;;  %s3158_s0 = sld [smem:[#allocation11_spill]] }
  0x11   : > { %p2768_p8 = pnand %p2428_p7, %p3150_p1 }
  0x13   : > { %p2529_p10 = pneg %p2768_p8 }
  0x16   : > { %s2527_s24 = scalar_lea.hbm %s3158_s0, 256 }
  0x17   : > { %p2528_p9 = scmp.ne.s32.totalorder %s3158_s0, %s2527_s24  ;;  %p2534_p13 = scmp.lt.u32.totalorder %s2527_s24, %s3158_s0 }
  0x19   : > { %p2530_p11 = pnand %p2529_p10, %p2528_p9 }
  0x1b   : > { %p2531_p12 = pneg %p2530_p11 }
  0x1d   : > { %p2536_p0 = pnand %p2534_p13, %p2531_p12 }
  0x1f   : > { %2539 = shalt.err (!%p2536_p0)
}
  0x20   : > { %s2540_s29 = scalar_lea.vmem %s293_s17, 256  ;;  %p2548_p4 = scmp.lt.s32.totalorder %s293_s17, %s293_s17 }
  0x21   : > { %p2541_p2 = scmp.ne.s32.totalorder %s293_s17, %s2540_s29  ;;  %p2549_p1 = scmp.lt.s32.totalorder %s2540_s29, %s2540_s29 }
  0x23   : > { %p2543_p3 = pnand %p2541_p2, %p2529_p10  ;;  %p2550_p5 = por %p2549_p1, %p2548_p4 }
  0x25   : > { %p2544_p7 = pneg %p2543_p3 }
  0x27   : > { %p2551_p6 = pnand %p2550_p5, %p2544_p7 }
  0x29   : > { %2554 = shalt.err (!%p2551_p6)
}
  0x2a   : > { %s2656_s30 = smov 128   ;;  %s2657_s16 = smov 8  }
  0x2b   : > { %2431 = dma.hbm_to_vmem [thread:$0]  (!%p2768_p8), %s3158_s0, 256, %s293_s17, [#allocation3], %s2656_s30, %s2656_s30, %s2657_s16  }
  0x2c   : > { %p51_p1 = scmp.eq.s32.totalorder %s50_s21, 0  ;;  %p60_p4 = scmp.ne.s32.totalorder %s2649_s11, %s2645_s10 }
  0x2d   : > { %p61_p5 = scmp.eq.s32.totalorder %s2653_s12, 0  ;;  %p2437_p6 = scmp.lt.s32.totalorder %s2653_s12, 2 }
  0x2e   : > { %s2802_s24 = scalar_select %p51_p1, %s2649_s11, %s53_s20  }
  0x2f   : > { %p62_p9 = por %p61_p5, %p60_p4  ;;  %s306_s25 = sand.u32 1, %s2649_s11  }
  0x30   : > { %s2226_s26 = sshll.u32 %s306_s25, 5  ;;  %s2275_s27 = sshll.u32 %s2653_s12, 9 }
  0x31   : > { %s3159_s1 = sld [smem:[#allocation12_spill]]  ;;  %s310_s17 = scalar_lea.vmem [#allocation5], %s2226_s26 }
  0x32   : > { %s317_s21 = sshll.u32 %s310_s17, 4  ;;  %p2813_p8 = pnand %p2437_p6, %p62_p9  ;;  %s2811_s21 = int_to_ptr.vmem [resolvable:$true] %s317_s21 }
  0x33   : > { %s2817_s12 = scalar_lea.sflag [#allocation6], %s306_s25 }
  0x34   : > { %p2557_p11 = pneg %p2813_p8 }
  0x37   : > { %s2809_s18 = scalar_lea.hbm %s3159_s1, %s2275_s27  ;;  %s2560_s27 = scalar_lea.hbm %s3159_s1, 1024 }
  0x38   : > { %s2555_s22 = scalar_lea.hbm %s2809_s18, 512  ;;  %p2561_p0 = scmp.lt.u32.totalorder %s2809_s18, %s3159_s1 }
  0x39   : > { %p2556_p10 = scmp.ne.s32.totalorder %s2809_s18, %s2555_s22  ;;  %p2562_p2 = scmp.lt.u32.totalorder %s2560_s27, %s2555_s22 }
  0x3a   : > { %p2564_p7 = scmp.lt.u32.totalorder %s2555_s22, %s2809_s18 }
  0x3b   : > { %p2558_p12 = pnand %p2557_p11, %p2556_p10  ;;  %p2563_p3 = por %p2562_p2, %p2561_p0 }
  0x3d   : > { %p2559_p13 = pneg %p2558_p12  ;;  %p2565_p1 = por %p2564_p7, %p2563_p3 }
  0x3f   : > { %p2566_p4 = pnand %p2565_p1, %p2559_p13 }
  0x41   : > { %2569 = shalt.err (!%p2566_p4)
}
  0x42   : > { %s2570_s25 = scalar_lea.vmem %s2811_s21, 512  ;;  %s2658_s17 = smov [#allocation5]  }
  0x43   : > { %p2571_p5 = scmp.ne.s32.totalorder %s2811_s21, %s2570_s25  ;;  %s2575_s23 = sshll.u32 %s2658_s17, 4  ;;  %s2576_s23 = int_to_ptr.vmem [resolvable:$false] %s2575_s23 }
  0x44   : > { %s2577_s26 = scalar_lea.vmem %s2576_s23, 1024  ;;  %p2578_p10 = scmp.lt.s32.totalorder %s2811_s21, %s2576_s23 }
  0x45   : > { %p2573_p6 = pnand %p2571_p5, %p2557_p11  ;;  %p2579_p12 = scmp.lt.s32.totalorder %s2577_s26, %s2570_s25 }
  0x47   : > { %p2574_p9 = pneg %p2573_p6  ;;  %p2580_p0 = por %p2579_p12, %p2578_p10 }
  0x49   : > { %p2581_p2 = pnand %p2580_p0, %p2574_p9 }
  0x4b   : > { %2584 = shalt.err (!%p2581_p2)
}
  0x4c   : > { %2435 = dma.hbm_to_vmem [thread:$0]  (!%p2813_p8), %s2809_s18, 512, %s2811_s21, %s2817_s12, %s2656_s30, %s2656_s30, %s2657_s16  }
  0x4d   : > { %p3161_p11 = scmp.ne.s32.totalorder %s3156_s15, 0 }
  0x4e   : > { %p3162_p13 = scmp.eq.s32.totalorder (!%p3161_p11), %s2747_s13, 0 }
  0x4f   : > { %335 = sbr.rel (%p3161_p11) target bundleno = 1390 (0x56e), region = 32 }
  0x56   : > { %2628 = dma.done.wait (%p3162_p13), [#allocation3], 256   ;;  %p3163_p3 = pmov %p3162_p13 }
  0x57   : > { %s341_s22 = sand.u32 1, %s2645_s10   ;;  %p3164_p7 = scmp.ne.s32.totalorder %s3155_s14, 0 }
  0x58   : > { %2630 = vsyncadd (%p3163_p3), [#allocation3], 4294967040  ;;  %s2231_s20 = sshll.u32 %s341_s22, 5  ;;  %s342_s27 = scalar_lea.sflag [#allocation6], %s341_s22 }
  0x59   : > { %s345_s28 = scalar_lea.vmem [#allocation5], %s2231_s20 }
  0x5a   : > { %2632 = dma.done.wait (%p3164_p7), %s342_s27, 512  }
  0x5b   : > { %2634 = vsyncadd (%p3164_p7), %s342_s27, 4294966784  ;;  %p407_p8 = scmp.lt.s32.totalorder %s2747_s13, 1  ;;  %p3165_p1 = scmp.ne.s32.totalorder %s2747_s13, 0 }
  0x5c   : > { %v443_v0 = vld [vmem:[#allocation2] sm:$0xff] (!%p3165_p1)  ;;  %vm445_vm0 = vcmask (!%p3165_p1), 261120   ;;  %v444_v1 = vld [vmem:[#allocation2 + $0x8] sm:$0xff] (!%p3165_p1) }
  0x5d   : > { %s2861_s15 = scalar_select %p407_p8, %s2747_s13, 1 }
  0x5e   : > { %442 = sbr.rel (%p3165_p1) target bundleno = 101 (0x65), region = 44  ;;  %446 = vst.msk [vmem:[#allocation7] sm:$0xff] (!%p3165_p1), %vm445_vm0, %v443_v0  ;;  %447 = vst.msk [vmem:[#allocation7 + $0x8] sm:$0xff] (!%p3165_p1), %vm445_vm0, %v444_v1 }
  0x5f   : > { %s2276_s21 = sshll.u32 %s2861_s15, 4  ;;  %s2240_s18 = sshll.u32 %s2861_s15, 3 }
  0x60   : > { %s414_s25 = scalar_lea.vmem %s3143_s3, %s2276_s21  ;;  %s2874_s23 = scalar_lea.vmem %s3144_s4, %s2276_s21 }
  0x61   : > { %s2879_s20 = scalar_lea.vmem %s3145_s5, %s2276_s21  ;;  %s2884_s16 = scalar_lea.vmem %s3146_s6, %s2276_s21 }
  0x62   : > { %s2890_s12 = scalar_lea.vmem %s3148_s8, %s2276_s21  ;;  %s2895_s14 = scalar_lea.vmem %s3147_s7, %s2240_s18 }
  0x65 PF: > { %v453_v2 = vld [vmem:[%s345_s28] sm:$0xff]  ;;  %v454_v3 = vld [vmem:[%s345_s28 + $0x8] sm:$0xff]  ;;  %v455_v4 = vld [vmem:[%s345_s28 + $0x10] sm:$0xff]  ;;  %vm450_vm1 = vcmask 261120   ;;  %v2659_v10 = vmov 0.0   ;;  %vm2660_vm2 = vmmov 0  }
  0x66   : > { %v2410_v5 = vpack.c.bf16 %v454_v3, %v453_v2  ;;  %v456_v6 = vld [vmem:[%s345_s28 + $0x18] sm:$0xff]  ;;  %v448_v7 = vld [vmem:[#allocation7] sm:$0xff]  ;;  %v449_v8 = vld [vmem:[#allocation7 + $0x8] sm:$0xff]  ;;  %2330 = vmatprep.subr.mxu1 %v2659_v10  ;;  %2332 = vmatprep.mubr.msk.f32.mxu1 %vm2660_vm2, %v2659_v10  ;;  %s3166_s28 = scalar_lea.vmem %s3142_s2, %s2861_s15  ;;  %s2661_s18 = smov 96   ;;  %vm567_vm3 = vcmask 64512   ;;  %vm1235_vm4 = vcmask 130048  }
  0x67   : > { %v2414_v9 = vpack.c.bf16 %v456_v6, %v455_v4  ;;  %451 = vst.msk [vmem:[%s414_s25] sm:$0xff] %vm450_vm1, %v448_v7  ;;  %2327 = vmatprep.mubr.msk.f32.mxu0 %vm450_vm1, %v448_v7  ;;  %452 = vst.msk [vmem:[%s414_s25 + $0x8] sm:$0xff] %vm450_vm1, %v449_v8  ;;  %v2244_v11 = vld [vmem:[%s3166_s28] ss:$0 sm:$0xff]  ;;  %s2662_s21 = smov 120   ;;  %s2663_s15 = smov 88  }
  0x68   : > { %2411 = vmatprep.subr.bf16.mxu0 %v2410_v5  ;;  %s2664_s25 = smov 80   ;;  %s2665_s26 = smov 112   ;;  %vm1237_vm5 = vcmask 195584   ;;  %vm1933_vm6 = vcmask 326656   ;;  %vm1935_vm7 = vcmask 392192   ;;  %vm1937_vm8 = vcmask 457728  }
  0x69   : > { %2413 = vmatpush3.bf16.msra.mxu0 %v2410_v5  ;;  %s2666_s22 = smov 72   ;;  %s2667_s27 = smov 104  }
  0x6a   : > { %2415 = vmatprep.subr.bf16.mxu0 %v2414_v9  ;;  %s2669_s30 = smov 56   ;;  %s2671_s29 = smov 48  }
  0x6b   : > { %s2672_s17 = smov 8   ;;  %s2673_s0 = smov 16  }
  0x6c   : > { %s2675_s1 = smov 32   ;;  %s2676_s28 = smov [#allocation7]  }
  0x6d   : > { %2417 = vmatpush3.bf16.msra.mxu0 %v2414_v9  ;;  %p2439_p4 = scmp.eq.s32.totalorder %s2747_s13, 1 }
  0x6e   : > { %2340 = vmatprep.subr.mxu0 %v2659_v10 }
  0x70   : > { %2328 = vmatmul.mubr.msk.f32.vlgmr.msra.gmra.mrb[0].mxu0 %vm450_vm1, %v449_v8 }
  0x71   : > { %2342 = vmatprep.mubr.msk.f32.mxu0 %vm2660_vm2, %v2659_v10 }
 0x143   : > { %v2329_v12 = vpop.f32.mrb[0].mxu0 }
 0x144   : > { %v2914_v13 = vadd.f32 %v2329_v12, %v2244_v11  ;;  %v536_v14 = vpop.f32.mrb[1].mxu0 }
 0x145   : > { %v2916_v15 = vadd.f32 %v2244_v11, %v536_v14 }
 0x146   : > { %546 = vst.msk [vmem:[%s2879_s20 + $0x8] sm:$0xff] %vm450_vm1, %v2914_v13  ;;  %v566_v17 = vmul.f32 0.35355338, %v2914_v13 }
 0x147   : > { %545 = vst.msk [vmem:[%s2879_s20] sm:$0xff] %vm450_vm1, %v2916_v15  ;;  %549 = vrot.lane.b32.xlu0 %v2916_v15, %s2661_s18  ;;  %v565_v16 = vmul.f32 0.35355338, %v2916_v15  ;;  %s2668_s20 = smov 64  }
 0x149   : > { %727 = vrot.lane.b32.xlu1 %v565_v16, %s2662_s21 }
 0x14b   : > { %729 = vrot.lane.b32.xlu0 %v2916_v15, %s2663_s15 }
 0x14d   : > { %894 = vrot.lane.b32.xlu1 %v2916_v15, %s2664_s25 }
 0x14f   : > { %892 = vrot.lane.b32.xlu0 %v565_v16, %s2665_s26 }
 0x151   : > { %1059 = vrot.lane.b32.xlu1 %v2916_v15, %s2666_s22 }
 0x153   : > { %1057 = vrot.lane.b32.xlu0 %v565_v16, %s2667_s27 }
 0x155   : > { %551 = vrot.lane.b32.xlu1 %v2914_v13, %s2661_s18  ;;  %s1998_s18 = sshll.u32 %s2676_s28, 4  ;;  %s1999_s18 = int_to_ptr.vmem [resolvable:$true] %s1998_s18 }
 0x156   : > { %p2592_p10 = scmp.lt.s32.totalorder %s1999_s18, %s1999_s18 }
 0x157   : > { %1400 = vrot.lane.b32.xlu0 %v2914_v13, %s2663_s15 }
 0x159   : > { %1398 = vrot.lane.b32.xlu1 %v566_v17, %s2662_s21  ;;  %s2585_s21 = scalar_lea.vmem %s1999_s18, 256 }
 0x15a   : > { %p2586_p5 = scmp.ne.s32.totalorder %s1999_s18, %s2585_s21  ;;  %p2593_p12 = scmp.lt.s32.totalorder %s2585_s21, %s2585_s21 }
 0x15b   : > { %1565 = vrot.lane.b32.xlu0 %v2914_v13, %s2664_s25 }
 0x15c   : > { %p2587_p6 = pnand %p2586_p5, %p2439_p4  ;;  %p2594_p0 = por %p2593_p12, %p2592_p10 }
 0x15d   : > { %1563 = vrot.lane.b32.xlu1 %v566_v17, %s2665_s26 }
 0x15e   : > { %p2588_p9 = pneg %p2587_p6 }
 0x15f   : > { %1730 = vrot.lane.b32.xlu0 %v2914_v13, %s2666_s22 }
 0x160   : > { %p2595_p2 = pnand %p2594_p0, %p2588_p9 }
 0x161   : > { %1728 = vrot.lane.b32.xlu1 %v566_v17, %s2667_s27 }
 0x163   : > { %557 = vrot.lane.b32.xlu0 %v2916_v15, %s2668_s20 }
 0x165   : > { %816 = vrot.lane.b32.xlu1 %v2916_v15, %s2669_s30 }
 0x1b9   : > { %v550_v18 = vpop.permute.xlu0 %549 }
 0x1ba   : > { %555 = vst.msk [vmem:[%s2874_s23] sm:$0xff] %vm450_vm1, %v550_v18  ;;  %2331 = vmatpush3.xpose.msk.msra.mxu1 %vm567_vm3, %v550_v18 }
 0x1bb   : > { %v728_v19 = vpop.permute.xlu1 %727  ;;  %2335 = vmatprep.subr.mxu1 %v2659_v10 }
 0x1bd   : > { %v730_v20 = vpop.permute.xlu0 %729  ;;  %2333 = vmatmul.mubr.msk.f32.vlgmr.msra.gmra.mrb[0].mxu1 %vm567_vm3, %v565_v16 }
 0x1be   : > { %2341 = vmatpush3.xpose.msk.msra.mxu0 %vm567_vm3, %v730_v20  ;;  %2337 = vmatprep.mubr.msk.f32.mxu1 %vm2660_vm2, %v2659_v10 }
 0x1bf   : > { %v895_v21 = vpop.permute.xlu1 %894  ;;  %2350 = vmatprep.subr.mxu0 %v2659_v10 }
 0x1c1   : > { %v893_v22 = vpop.permute.xlu0 %892  ;;  %2343 = vmatmul.mubr.msk.f32.vlgmr.msra.gmra.mrb[2].mxu0 %vm567_vm3, %v728_v19 }
 0x1c2   : > { %2351 = vmatpush3.xpose.msk.msra.mxu0 %vm567_vm3, %v895_v21  ;;  %2352 = vmatprep.mubr.msk.f32.mxu0 %vm2660_vm2, %v2659_v10 }
 0x1c3   : > { %v1060_v23 = vpop.permute.xlu1 %1059  ;;  %2360 = vmatprep.subr.mxu0 %v2659_v10 }
 0x1c5   : > { %v1058_v24 = vpop.permute.xlu0 %1057  ;;  %2353 = vmatmul.mubr.msk.f32.vlgmr.msra.gmra.mrb[4].mxu0 %vm567_vm3, %v893_v22 }
 0x1c6   : > { %2361 = vmatpush3.xpose.msk.msra.mxu0 %vm567_vm3, %v1060_v23  ;;  %2362 = vmatprep.mubr.msk.f32.mxu0 %vm2660_vm2, %v2659_v10 }
 0x1c7   : > { %v552_v25 = vpop.permute.xlu1 %551  ;;  %2370 = vmatprep.subr.mxu0 %v2659_v10 }
 0x1c8   : > { %556 = vst.msk [vmem:[%s2874_s23 + $0x8] sm:$0xff] %vm450_vm1, %v552_v25  ;;  %s2670_s23 = smov 40  }
 0x1c9   : > { %v1401_v26 = vpop.permute.xlu0 %1400  ;;  %2363 = vmatmul.mubr.msk.f32.vlgmr.msra.gmra.mrb[6].mxu0 %vm567_vm3, %v1058_v24 }
 0x1ca   : > { %2371 = vmatpush3.xpose.msk.msra.mxu0 %vm567_vm3, %v552_v25  ;;  %2372 = vmatprep.mubr.msk.f32.mxu0 %vm2660_vm2, %v2659_v10 }
 0x1cb   : > { %2380 = vmatprep.subr.mxu0 %v2659_v10  ;;  %v1399_v27 = vpop.permute.xlu1 %1398 }
 0x1cd   : > { %v1566_v28 = vpop.permute.xlu0 %1565  ;;  %2373 = vmatmul.mubr.msk.f32.vlgmr.msra.gmra.mrb[8].mxu0 %vm567_vm3, %v566_v17 }
 0x1ce   : > { %2381 = vmatpush3.xpose.msk.msra.mxu0 %vm567_vm3, %v1401_v26  ;;  %2382 = vmatprep.mubr.msk.f32.mxu0 %vm2660_vm2, %v2659_v10 }
 0x1cf   : > { %2390 = vmatprep.subr.mxu0 %v2659_v10  ;;  %v1564_v30 = vpop.permute.xlu1 %1563 }
 0x1d1   : > { %v1731_v29 = vpop.permute.xlu0 %1730  ;;  %2383 = vmatmul.mubr.msk.f32.vlgmr.msra.gmra.mrb[10].mxu0 %vm567_vm3, %v1399_v27 }
 0x1d2   : > { %2391 = vmatpush3.xpose.msk.msra.mxu0 %vm567_vm3, %v1566_v28  ;;  %2392 = vmatprep.mubr.msk.f32.mxu0 %vm2660_vm2, %v2659_v10 }
 0x1d3   : > { %2400 = vmatprep.subr.mxu0 %v2659_v10  ;;  %v1729_v32 = vpop.permute.xlu1 %1728 }
 0x1d5   : > { %v558_v31 = vpop.permute.xlu0 %557  ;;  %2393 = vmatmul.mubr.msk.f32.vlgmr.msra.gmra.mrb[12].mxu0 %vm567_vm3, %v1564_v30 }
 0x1d6   : > { %563 = vst.msk [vmem:[%s2884_s16] sm:$0xff] %vm450_vm1, %v558_v31  ;;  %2336 = vmatpush3.msra.mxu1 %v558_v31  ;;  %2401 = vmatpush3.xpose.msk.msra.mxu0 %vm567_vm3, %v1731_v29 }
 0x1d7   : > { %2402 = vmatprep.mubr.msk.f32.mxu0 %vm2660_vm2, %v2659_v10  ;;  %2345 = vmatprep.subr.mxu1 %v2659_v10  ;;  %v2994_v57 = vpop.permute.xlu1 %816 }
 0x1d9   : > { %2403 = vmatmul.mubr.msk.f32.vlgmr.msra.gmra.mrb[14].mxu0 %vm567_vm3, %v1729_v32 }
 0x290   : > { %v639_v33 = vpop.f32.mrb[0].mxu1 }
 0x291   : > { %v2334_v34 = vpop.f32.mrb[1].mxu1  ;;  %v643_v35 = vsel %vm567_vm3, %v639_v33, -inf }
 0x292   : > { %644 = vmax.xlane.f32.xlu0 %v643_v35 }
 0x294   : > { %v801_v36 = vpop.f32.mrb[2].mxu0 }
 0x295   : > { %v2344_v37 = vpop.f32.mrb[3].mxu0  ;;  %v805_v38 = vsel %vm567_vm3, %v801_v36, -inf }
 0x296   : > { %806 = vmax.xlane.f32.xlu1 %v805_v38 }
 0x298   : > { %v966_v39 = vpop.f32.mrb[4].mxu0 }
 0x299   : > { %v2354_v40 = vpop.f32.mrb[5].mxu0  ;;  %v970_v41 = vsel %vm567_vm3, %v966_v39, -inf }
 0x29a   : > { %971 = vmax.xlane.f32.xlu0 %v970_v41 }
 0x29c   : > { %v1131_v42 = vpop.f32.mrb[6].mxu0 }
 0x29d   : > { %v2364_v43 = vpop.f32.mrb[7].mxu0  ;;  %v1135_v44 = vsel %vm567_vm3, %v1131_v42, -inf }
 0x29e   : > { %1136 = vmax.xlane.f32.xlu0 %v1135_v44 }
 0x2a0   : > { %v1310_v45 = vpop.f32.mrb[8].mxu0 }
 0x2a1   : > { %v2374_v46 = vpop.f32.mrb[9].mxu0  ;;  %v1314_v47 = vsel %vm567_vm3, %v1310_v45, -inf }
 0x2a2   : > { %1315 = vmax.xlane.f32.xlu1 %v1314_v47 }
 0x2a4   : > { %v1472_v48 = vpop.f32.mrb[10].mxu0 }
 0x2a5   : > { %v2384_v49 = vpop.f32.mrb[11].mxu0  ;;  %v1476_v50 = vsel %vm567_vm3, %v1472_v48, -inf }
 0x2a6   : > { %1477 = vmax.xlane.f32.xlu0 %v1476_v50 }
 0x2a8   : > { %v1637_v51 = vpop.f32.mrb[12].mxu0 }
 0x2a9   : > { %v2394_v52 = vpop.f32.mrb[13].mxu0  ;;  %v1641_v53 = vsel %vm567_vm3, %v1637_v51, -inf }
 0x2aa   : > { %1642 = vmax.xlane.f32.xlu1 %v1641_v53 }
 0x2ac   : > { %v1802_v54 = vpop.f32.mrb[14].mxu0 }
 0x2ad   : > { %v2404_v55 = vpop.f32.mrb[15].mxu0  ;;  %v1806_v56 = vsel %vm567_vm3, %v1802_v54, -inf }
 0x2ae   : > { %1807 = vmax.xlane.f32.xlu0 %v1806_v56 }
 0x2bb   : > { %1146 = vrot.lane.b32.xlu1 %v2916_v15, %s2670_s23 }
 0x2c4   : > { %981 = vrot.lane.b32.xlu0 %v2916_v15, %s2671_s29 }
 0x31f   : > { %v645_v58 = vpop.xlane.xlu0 %644 }
 0x320   : > { %v646_v59 = vsub.f32 %v639_v33, %v645_v58 }
 0x322   : > { %v647_v60 = vmul.f32 1.442695, %v646_v59 }
 0x323   : > { %v807_v61 = vpop.xlane.xlu1 %806 }
 0x324   : > { %2495 = vpow2.f32 %v647_v60  ;;  %v808_v62 = vsub.f32 %v801_v36, %v807_v61 }
 0x326   : > { %v809_v63 = vmul.f32 1.442695, %v808_v62 }
 0x327   : > { %v972_v0 = vpop.xlane.xlu0 %971 }
 0x328   : > { %2497 = vpow2.f32 %v809_v63  ;;  %v973_v1 = vsub.f32 %v966_v39, %v972_v0 }
 0x32a   : > { %v974_v2 = vmul.f32 1.442695, %v973_v1 }
 0x32b   : > { %v1137_v3 = vpop.xlane.xlu0 %1136 }
 0x32c   : > { %2499 = vpow2.f32 %v974_v2  ;;  %v1138_v4 = vsub.f32 %v1131_v42, %v1137_v3 }
 0x32e   : > { %v2496_v5 = vpop.eup %2495  ;;  %v1139_v6 = vmul.f32 1.442695, %v1138_v4 }
 0x32f   : > { %v649_v7 = vsel %vm567_vm3, %v2496_v5, 0.0  ;;  %v1316_v16 = vpop.xlane.xlu1 %1315 }
 0x330   : > { %2501 = vpow2.f32 %v1139_v6  ;;  %650 = vadd.xlane.f32.xlu1 %v649_v7  ;;  %v1317_v17 = vsub.f32 %v1310_v45, %v1316_v16 }
 0x332   : > { %v2498_v8 = vpop.eup %2497  ;;  %v1318_v21 = vmul.f32 1.442695, %v1317_v17 }
 0x333   : > { %v811_v9 = vsel %vm567_vm3, %v2498_v8, 0.0  ;;  %v1478_v18 = vpop.xlane.xlu0 %1477 }
 0x334   : > { %812 = vadd.xlane.f32.xlu0 %v811_v9  ;;  %v1479_v20 = vsub.f32 %v1472_v48, %v1478_v18  ;;  %2503 = vpow2.f32 %v1318_v21 }
 0x336   : > { %v2998_v11 = vpop.eup %2499  ;;  %v1480_v24 = vmul.f32 1.442695, %v1479_v20 }
 0x337   : > { %v976_v12 = vsel %vm567_vm3, %v2998_v11, 0.0  ;;  %v1643_v19 = vpop.xlane.xlu1 %1642 }
 0x338   : > { %977 = vadd.xlane.f32.xlu1 %v976_v12  ;;  %v1644_v22 = vsub.f32 %v1637_v51, %v1643_v19  ;;  %2505 = vpow2.f32 %v1480_v24 }
 0x33a   : > { %v3002_v14 = vpop.eup %2501  ;;  %v1645_v25 = vmul.f32 1.442695, %v1644_v22 }
 0x33b   : > { %v1141_v15 = vsel %vm567_vm3, %v3002_v14, 0.0  ;;  %v1808_v23 = vpop.xlane.xlu0 %1807  ;;  %v1147_v36 = vpop.permute.xlu1 %1146 }
 0x33c   : > { %1142 = vadd.xlane.f32.xlu0 %v1141_v15  ;;  %v1809_v26 = vsub.f32 %v1802_v54, %v1808_v23  ;;  %2507 = vpow2.f32 %v1645_v25 }
 0x33e   : > { %v1810_v27 = vmul.f32 1.442695, %v1809_v26  ;;  %v3010_v28 = vpop.eup %2503 }
 0x33f   : > { %v1320_v30 = vsel %vm567_vm3, %v3010_v28, 0.0  ;;  %v982_v37 = vpop.permute.xlu0 %981 }
 0x340   : > { %2509 = vpow2.f32 %v1810_v27 }
 0x342   : > { %v3012_v29 = vpop.eup %2505 }
 0x343   : > { %v1482_v33 = vsel %vm567_vm3, %v3012_v29, 0.0 }
 0x346   : > { %v3016_v31 = vpop.eup %2507 }
 0x347   : > { %v1647_v32 = vsel %vm567_vm3, %v3016_v31, 0.0 }
 0x349   : > { %1487 = vrot.lane.b32.xlu1 %v2914_v13, %s2669_s30 }
 0x34a   : > { %v3022_v34 = vpop.eup %2509 }
 0x34b   : > { %v1812_v35 = vsel %vm567_vm3, %v3022_v34, 0.0 }
 0x352   : > { %559 = vrot.lane.b32.xlu0 %v2914_v13, %s2668_s20 }
 0x36d   : > { %1321 = vadd.xlane.f32.xlu1 %v1320_v30 }
 0x371   : > { %1648 = vadd.xlane.f32.xlu1 %v1647_v32  ;;  %1483 = vadd.xlane.f32.xlu0 %v1482_v33 }
 0x375   : > { %1813 = vadd.xlane.f32.xlu1 %v1812_v35 }
 0x386   : > { %1817 = vrot.lane.b32.xlu1 %v2914_v13, %s2670_s23 }
 0x387   : > { %1652 = vrot.lane.b32.xlu0 %v2914_v13, %s2671_s29 }
 0x3bd   : > { %v651_v38 = vpop.xlane.xlu1 %650 }
 0x3be   : > { %2511 = vrcp.f32 %v651_v38 }
 0x3c1   : > { %v813_v39 = vpop.xlane.xlu0 %812 }
 0x3c2   : > { %2513 = vrcp.f32 %v813_v39 }
 0x3c5   : > { %v978_v40 = vpop.xlane.xlu1 %977 }
 0x3c6   : > { %2515 = vrcp.f32 %v978_v40 }
 0x3c8   : > { %v2512_v41 = vpop.eup %2511 }
 0x3c9   : > { %v3030_v42 = vmul.f32 %v2512_v41, %v2496_v5  ;;  %v1143_v43 = vpop.xlane.xlu0 %1142  ;;  %v1488_v50 = vpop.permute.xlu1 %1487 }
 0x3ca   : > { %2517 = vrcp.f32 %v1143_v43 }
 0x3cb   : > { %2338 = vmatmul.mubr.msk.f32.vlgmr.msra.gmra.mrb[2].mxu1 %vm567_vm3, %v3030_v42 }
 0x3cc   : > { %v2514_v44 = vpop.eup %2513  ;;  %2346 = vmatpush3.msra.mxu1 %v2994_v57  ;;  %2347 = vmatprep.mubr.msk.f32.mxu1 %vm2660_vm2, %v2659_v10 }
 0x3cd   : > { %v560_v13 = vpop.permute.xlu0 %559  ;;  %2355 = vmatprep.subr.mxu1 %v2659_v10  ;;  %v815_v45 = vmul.f32 %v2514_v44, %v2498_v8 }
 0x3ce   : > { %564 = vst.msk [vmem:[%s2884_s16 + $0x8] sm:$0xff] %vm450_vm1, %v560_v13  ;;  %s2674_s16 = smov 24  }
 0x3cf   : > { %1908 = vrot.lane.b32.xlu0 %v815_v45, %s2672_s17  ;;  %2348 = vmatmul.mubr.msk.f32.vlgmr.msra.gmra.mrb[4].mxu1 %vm567_vm3, %v815_v45 }
 0x3d0   : > { %v2516_v46 = vpop.eup %2515  ;;  %2356 = vmatpush3.msra.mxu1 %v982_v37  ;;  %2357 = vmatprep.mubr.msk.f32.mxu1 %vm2660_vm2, %v2659_v10 }
 0x3d1   : > { %2365 = vmatprep.subr.mxu1 %v2659_v10  ;;  %v980_v47 = vmul.f32 %v2516_v46, %v2998_v11 }
 0x3d3   : > { %1911 = vrot.lane.b32.xlu1 %v980_v47, %s2673_s0  ;;  %2358 = vmatmul.mubr.msk.f32.vlgmr.msra.gmra.mrb[6].mxu1 %vm567_vm3, %v980_v47 }
 0x3d4   : > { %v2518_v48 = vpop.eup %2517  ;;  %2366 = vmatpush3.msra.mxu1 %v1147_v36  ;;  %2367 = vmatprep.mubr.msk.f32.mxu1 %vm2660_vm2, %v2659_v10 }
 0x3d5   : > { %2375 = vmatprep.subr.mxu1 %v2659_v10  ;;  %v1145_v49 = vmul.f32 %v2518_v48, %v3002_v14 }
 0x3d7   : > { %1914 = vrot.lane.b32.xlu0 %v1145_v49, %s2674_s16  ;;  %2368 = vmatmul.mubr.msk.f32.vlgmr.msra.gmra.mrb[8].mxu1 %vm567_vm3, %v1145_v49 }
 0x3d8   : > { %2376 = vmatpush3.msra.mxu1 %v560_v13  ;;  %2377 = vmatprep.mubr.msk.f32.mxu1 %vm2660_vm2, %v2659_v10 }
 0x3d9   : > { %2385 = vmatprep.subr.mxu1 %v2659_v10 }
 0x3fa   : > { %v1322_v51 = vpop.xlane.xlu1 %1321 }
 0x3fb   : > { %2519 = vrcp.f32 %v1322_v51 }
 0x3fe   : > { %v1649_v52 = vpop.xlane.xlu1 %1648  ;;  %v1484_v53 = vpop.xlane.xlu0 %1483 }
 0x3ff   : > { %2521 = vrcp.f32 %v1484_v53 }
 0x400   : > { %2523 = vrcp.f32 %v1649_v52 }
 0x402   : > { %v1814_v54 = vpop.xlane.xlu1 %1813  ;;  %v1653_v60 = vpop.permute.xlu0 %1652 }
 0x403   : > { %2525 = vrcp.f32 %v1814_v54 }
 0x405   : > { %v2520_v55 = vpop.eup %2519 }
 0x406   : > { %v1324_v56 = vmul.f32 %v2520_v55, %v3010_v28  ;;  %v1818_v63 = vpop.permute.xlu1 %1817 }
 0x408   : > { %1917 = vrot.lane.b32.xlu1 %v1324_v56, %s2675_s1  ;;  %2378 = vmatmul.mubr.msk.f32.vlgmr.msra.gmra.mrb[10].mxu1 %vm567_vm3, %v1324_v56 }
 0x409   : > { %2386 = vmatpush3.msra.mxu1 %v1488_v50  ;;  %2387 = vmatprep.mubr.msk.f32.mxu1 %vm2660_vm2, %v2659_v10  ;;  %v2522_v57 = vpop.eup %2521 }
 0x40a   : > { %2395 = vmatprep.subr.mxu1 %v2659_v10  ;;  %v1486_v58 = vmul.f32 %v2522_v57, %v3012_v29  ;;  %v2524_v59 = vpop.eup %2523 }
 0x40b   : > { %v1651_v61 = vmul.f32 %v2524_v59, %v3016_v31 }
 0x40c   : > { %1920 = vrot.lane.b32.xlu0 %v1486_v58, %s2670_s23  ;;  %2388 = vmatmul.mubr.msk.f32.vlgmr.msra.gmra.mrb[12].mxu1 %vm567_vm3, %v1486_v58 }
 0x40d   : > { %2396 = vmatpush3.msra.mxu1 %v1653_v60  ;;  %2397 = vmatprep.mubr.msk.f32.mxu1 %vm2660_vm2, %v2659_v10  ;;  %v2526_v62 = vpop.eup %2525 }
 0x40e   : > { %2405 = vmatprep.subr.mxu1 %v2659_v10  ;;  %v1816_v0 = vmul.f32 %v2526_v62, %v3022_v34 }
 0x410   : > { %2398 = vmatmul.mubr.msk.f32.vlgmr.msra.gmra.mrb[14].mxu1 %vm567_vm3, %v1651_v61 }
 0x411   : > { %2406 = vmatpush3.msra.mxu1 %v1818_v63  ;;  %2407 = vmatprep.mubr.msk.f32.mxu1 %vm2660_vm2, %v2659_v10 }
 0x414   : > { %2408 = vmatmul.mubr.msk.f32.vlgmr.msra.gmra.mrb[16].mxu1 %vm567_vm3, %v1816_v0 }
 0x441   : > { %v1909_v1 = vpop.permute.xlu0 %1908 }
 0x442   : > { %v1929_v2 = vsel %vm567_vm3, %v3030_v42, %v1909_v1 }
 0x445   : > { %v1912_v3 = vpop.permute.xlu1 %1911 }
 0x446   : > { %v1930_v4 = vsel %vm1235_vm4, %v1929_v2, %v1912_v3 }
 0x449   : > { %v1915_v5 = vpop.permute.xlu0 %1914 }
 0x44a   : > { %v1931_v6 = vsel %vm1237_vm5, %v1930_v4, %v1915_v5 }
 0x47a   : > { %v1918_v25 = vpop.permute.xlu1 %1917 }
 0x47b   : > { %v1932_v38 = vsel %vm450_vm1, %v1931_v6, %v1918_v25 }
 0x47e   : > { %v1921_v24 = vpop.permute.xlu0 %1920 }
 0x49e   : > { %v723_v7 = vpop.f32.mrb[2].mxu1 }
 0x49f   : > { %v2339_v8 = vpop.f32.mrb[3].mxu1 }
 0x4a2   : > { %v888_v9 = vpop.f32.mrb[4].mxu1 }
 0x4a3   : > { %1223 = vrot.lane.b32.xlu0 %v888_v9, %s2672_s17  ;;  %v2349_v10 = vpop.f32.mrb[5].mxu1 }
 0x4a6   : > { %v1053_v11 = vpop.f32.mrb[6].mxu1 }
 0x4a7   : > { %1227 = vrot.lane.b32.xlu1 %v1053_v11, %s2673_s0  ;;  %v2359_v12 = vpop.f32.mrb[7].mxu1 }
 0x4aa   : > { %v1218_v14 = vpop.f32.mrb[8].mxu1 }
 0x4ab   : > { %1231 = vrot.lane.b32.xlu0 %v1218_v14, %s2674_s16  ;;  %v2369_v15 = vpop.f32.mrb[9].mxu1 }
 0x4db   : > { %v1394_v16 = vpop.f32.mrb[10].mxu1 }
 0x4dc   : > { %v2379_v17 = vpop.f32.mrb[11].mxu1 }
 0x4df   : > { %v1559_v18 = vpop.f32.mrb[12].mxu1 }
 0x4e0   : > { %1894 = vrot.lane.b32.xlu1 %v1559_v18, %s2672_s17  ;;  %v2389_v19 = vpop.f32.mrb[13].mxu1 }
 0x4e3   : > { %v1724_v20 = vpop.f32.mrb[14].mxu1 }
 0x4e4   : > { %1898 = vrot.lane.b32.xlu0 %v1724_v20, %s2673_s0  ;;  %v2399_v21 = vpop.f32.mrb[15].mxu1 }
 0x4e7   : > { %v1889_v22 = vpop.f32.mrb[16].mxu1 }
 0x4e8   : > { %1926 = vrot.lane.b32.xlu0 %v1816_v0, %s2669_s30  ;;  %1902 = vrot.lane.b32.xlu1 %v1889_v22, %s2674_s16  ;;  %v2409_v23 = vpop.f32.mrb[17].mxu1 }
 0x4ec   : > { %1923 = vrot.lane.b32.xlu1 %v1651_v61, %s2671_s29 }
 0x515   : > { %v1224_v26 = vpop.permute.xlu0 %1223 }
 0x516   : > { %v1234_v28 = vsel %vm567_vm3, %v723_v7, %v1224_v26 }
 0x519   : > { %v1228_v27 = vpop.permute.xlu1 %1227 }
 0x51a   : > { %v1236_v29 = vsel %vm1235_vm4, %v1234_v28, %v1228_v27 }
 0x51d   : > { %v1232_v30 = vpop.permute.xlu0 %1231 }
 0x51e   : > { %v1238_v31 = vsel %vm1237_vm5, %v1236_v29, %v1232_v30 }
 0x51f   : > { %1941 = vst.msk [vmem:[%s2890_s12] sm:$0xff] %vm450_vm1, %v1238_v31  ;;  %1943 = vst.msk [vmem:[#allocation7] sm:$0xff] %vm450_vm1, %v1238_v31 }
 0x552   : > { %v1895_v32 = vpop.permute.xlu1 %1894 }
 0x553   : > { %v1905_v34 = vsel %vm567_vm3, %v1394_v16, %v1895_v32 }
 0x556   : > { %v1899_v33 = vpop.permute.xlu0 %1898 }
 0x557   : > { %v1906_v35 = vsel %vm1235_vm4, %v1905_v34, %v1899_v33 }
 0x55a   : > { %v1903_v36 = vpop.permute.xlu1 %1902 }
 0x55b   : > { %v1907_v37 = vsel %vm1237_vm5, %v1906_v35, %v1903_v36 }
 0x55c   : > { %1942 = vst.msk [vmem:[%s2890_s12 + $0x8] sm:$0xff] %vm450_vm1, %v1907_v37  ;;  %1944 = vst.msk [vmem:[#allocation7 + $0x8] sm:$0xff] %vm450_vm1, %v1907_v37 }
 0x55d   : > { %2598 = shalt.err (!%p2595_p2)
}
 0x55e   : > { %s2599_s12 = scalar_lea.hbm %s3149_s9, 256 }
 0x55f   : > { %p2600_p11 = scmp.ne.s32.totalorder %s3149_s9, %s2599_s12  ;;  %p2605_p7 = scmp.lt.u32.totalorder %s2599_s12, %s3149_s9 }
 0x561   : > { %p2601_p13 = pnand %p2600_p11, %p2439_p4 }
 0x563   : > { %p2602_p3 = pneg %p2601_p13 }
 0x565   : > { %p2607_p8 = pnand %p2605_p7, %p2602_p3 }
 0x567   : > { %2610 = shalt.err (!%p2607_p8)
}
 0x568   : > { %s2677_s30 = smov 128   ;;  %v1934_v39 = vsel %vm1933_vm6, %v1932_v38, %v1921_v24  ;;  %vm1939_vm9 = vcmask 523264   ;;  %v1924_v40 = vpop.permute.xlu1 %1923  ;;  %v1927_v41 = vpop.permute.xlu0 %1926 }
 0x569   : > { %2425 = dma.vmem_to_hbm [thread:$0]  (%p2439_p4), %s1999_s18, 256, %s3149_s9, [#allocation4], %s2677_s30, %s2677_s30, %s2672_s17   ;;  %v1936_v42 = vsel %vm1935_vm7, %v1934_v39, %v1924_v40 }
 0x56a   : > { %v1938_v43 = vsel %vm1937_vm8, %v1936_v42, %v1927_v41 }
 0x56b   : > { %1940 = vst.msk [vmem:[%s2895_s14] sm:$0xff] %vm1939_vm9, %v1938_v43 }
 0x56c   : > { %2636 = dma.done.wait (%p2439_p4), [#allocation4], 256  }
 0x56d   : > { %2638 = vsyncadd (%p2439_p4), [#allocation4], 4294967040 }
 0x56e PF: > { %p22_p1 = scmp.ge.s32.totalorder %s2773_s19, 4   ;;  %s3167_s30 = smov %s2645_s10 }
 0x56f   : > { %s3168_s10 = smov %s2649_s11  ;;  %s3169_s11 = smov %s2802_s24 }
 0x570   : > { %s3170_s12 = smov %s2773_s19  ;;  %24 = sbr.rel (!%p22_p1) target bundleno = 8 (0x8), region = 153 }
 0x577   :  { %2061 = vsyncpa [#allocation3], 1 }
 0x578   :  { %2063 = vsyncpa [#allocation3 + $0x1], 1 }
 0x579   :  { %2064 = vsyncpa [#allocation6], 1 }
 0x57a   :  { %2066 = vsyncpa [#allocation6 + $0x1], 1 }
 0x57b   :  { %2067 = vsyncpa [#allocation4], 1 }
 0x57c   :  { %2069 = vsyncpa [#allocation4 + $0x1], 1 }

</bundles_post_ra>
